<compile_context>
chip_gen: v7x
topology: tpu7x:2x2x1
jax: 0.10.0
libtpu: 0.0.40
codegen_flags: <defaults>
</compile_context>

<pallas_src>
import functools

import jax
import jax.numpy as jnp
from jax.experimental import pallas as pl
from jax.experimental.pallas import tpu as pltpu


def _round_up(v, m):
    return ((v + m - 1) // m) * m


def _pick_tm(M, tm_max):
    """Balanced row tiles: keeps padding below one sublane group per tile."""
    n_tiles = -(-M // tm_max)
    tm = _round_up(-(-M // n_tiles), 8)
    return tm, _round_up(M, tm)


def _pick_tk(K, tk_max):
    """Reduction tile: a divisor of K (never pads the weight along K)."""
    if K % 128 == 0 and K > tk_max:
        t = tk_max - tk_max % 128
        while t >= 128:
            if K % t == 0:
                return t
            t -= 128
    return K                      # full-extent block (allowed for any size)


def _pick_tn(N, tn_max):
    """Output-column tile. Avoids jnp.pad on the full weight whenever possible."""
    if N <= tn_max:
        return N, N               # single full-extent block, no padding
    if N % 128 == 0:
        t = tn_max - tn_max % 128
        while t >= 128:
            if N % t == 0:
                return t, N
            t -= 128
    # Rare: large ragged N -> pad to a lane multiple.
    # TODO(synk): handle the ragged last N tile in-kernel instead of padding W.
    Np = _round_up(N, 128)
    t = tn_max - tn_max % 128
    while t > 128 and Np % t != 0:
        t -= 128
    return t, Np


def lora_kernel(x_ref, w_ref, b_ref, wa_ref, wb_ref, o_ref, acc_ref, a_ref,
                *, cache_a):
    # x_ref:[tm,tk]  w_ref:[tk,tn]  b_ref:[1,tn](f32)  wa_ref:[tk,Rp]  wb_ref:[Rp,tn]
    # acc_ref:[tm,tn] f32 scratch   a_ref:[tm,Rp] f32 scratch (LoRA down-proj)
    j = pl.program_id(1)
    k = pl.program_id(2)
    nk = pl.num_programs(2)

    @pl.when(k == 0)
    def _():
        acc_ref[...] = jnp.zeros_like(acc_ref)

    if cache_a:
        # a = x @ Wa is invariant across the N axis: accumulate it only on the
        # first N tile and reuse for all others.  This carries state across j,
        # so the wrapper marks the N axis "arbitrary" in this configuration.
        @pl.when(jnp.logical_and(j == 0, k == 0))
        def _():
            a_ref[...] = jnp.zeros_like(a_ref)

        @pl.when(j == 0)
        def _():
            a_ref[...] += jnp.dot(x_ref[...], wa_ref[...],
                                  preferred_element_type=jnp.float32)
    else:
        # Single row tile (decode regime): recompute a per N tile (tiny flops)
        # so the N axis can stay "parallel" for megacore sharding on v7x.
        @pl.when(k == 0)
        def _():
            a_ref[...] = jnp.zeros_like(a_ref)

        a_ref[...] += jnp.dot(x_ref[...], wa_ref[...],
                              preferred_element_type=jnp.float32)

    acc_ref[...] += jnp.dot(x_ref[...], w_ref[...],
                            preferred_element_type=jnp.float32)

    @pl.when(k == nk - 1)
    def _():
        lora = jnp.dot(a_ref[...].astype(wb_ref.dtype), wb_ref[...],
                       preferred_element_type=jnp.float32)
        o_ref[...] = (acc_ref[...] + b_ref[...] + lora).astype(o_ref.dtype)


def lora_linear(x2d, w, b, wa, wb, *, tm_max=256, tn_max=512, tk_max=512,
                compute_dtype=jnp.bfloat16):
    """y = x @ W + b + (x @ Wa) @ Wb   (weights pre-transposed to [in, out]).

    Default path: bf16 MXU compute with f32 accumulation; bias stays f32 and the
    output keeps the input dtype.  Pass compute_dtype=None for pure f32 compute.
    """
    M, K = x2d.shape
    N = w.shape[1]
    R = wa.shape[1]
    out_dtype = x2d.dtype

    if compute_dtype is not None:
        x2d = x2d.astype(compute_dtype)
        w = w.astype(compute_dtype)
        wa = wa.astype(compute_dtype)
        wb = wb.astype(compute_dtype)
    b = b.astype(jnp.float32)            # added to the f32 accumulator

    tm, Mp = _pick_tm(M, tm_max)
    tn, Np = _pick_tn(N, tn_max)
    tk = _pick_tk(K, tk_max)
    Rp = _round_up(R, 128)               # pad rank to one full MXU lane tile

    if Mp != M:
        x2d = jnp.pad(x2d, ((0, Mp - M), (0, 0)))
    if Rp != R:                          # tiny low-rank factors; cheap to pad
        wa = jnp.pad(wa, ((0, 0), (0, Rp - R)))
        wb = jnp.pad(wb, ((0, Rp - R), (0, 0)))
    if Np != N:                          # rare (large ragged N only)
        w = jnp.pad(w, ((0, 0), (0, Np - N)))
        b = jnp.pad(b, ((0, Np - N),))
        wb = jnp.pad(wb, ((0, 0), (0, Np - N)))
    b2d = b.reshape(1, Np)

    grid = (Mp // tm, Np // tn, K // tk)
    n_i, n_j, _ = grid

    # Cache the LoRA down-projection across N tiles only when there is more than
    # one row tile; otherwise keep N "parallel" so both v7x cores get work.
    cache_a = n_i >= 2
    dim_sem = ("parallel", "arbitrary" if cache_a else "parallel", "arbitrary")

    isz = lambda a: jnp.dtype(a.dtype).itemsize
    cost = pl.CostEstimate(
        flops=(2 * Mp * Np * K
               + 2 * Mp * K * Rp * (1 if cache_a else n_j)
               + 2 * Mp * Rp * Np),
        transcendentals=0,
        bytes_accessed=int(
            x2d.size * isz(x2d) * n_j                      # x re-streamed per N tile
            + w.size * isz(w) * n_i                        # W re-streamed per M tile
            + wa.size * isz(wa) * n_i * (1 if cache_a else n_j)
            + wb.size * isz(wb) * n_i
            + b2d.size * isz(b2d) * n_i
            + Mp * Np * jnp.dtype(out_dtype).itemsize),
    )

    out = pl.pallas_call(
        functools.partial(lora_kernel, cache_a=cache_a),
        out_shape=jax.ShapeDtypeStruct((Mp, Np), out_dtype),
        grid_spec=pltpu.PrefetchScalarGridSpec(
            num_scalar_prefetch=0,
            grid=grid,
            in_specs=[
                pl.BlockSpec((tm, tk), lambda i, j, k: (i, k)),   # x tile
                pl.BlockSpec((tk, tn), lambda i, j, k: (k, j)),   # W tile (streamed)
                pl.BlockSpec((1, tn), lambda i, j, k: (0, j)),    # bias tile (f32)
                pl.BlockSpec((tk, Rp), lambda i, j, k: (k, 0)),   # Wa tile
                pl.BlockSpec((Rp, tn), lambda i, j, k: (0, j)),   # Wb tile
            ],
            out_specs=pl.BlockSpec((tm, tn), lambda i, j, k: (i, j)),
            scratch_shapes=[
                pltpu.VMEM((tm, tn), jnp.float32),   # base-GEMM accumulator
                pltpu.VMEM((tm, Rp), jnp.float32),   # LoRA down-proj accumulator
            ],
        ),
        compiler_params=pltpu.CompilerParams(
            dimension_semantics=dim_sem,
            # K tiling keeps per-step residency at a few MiB; 48 MiB leaves
            # headroom below v7x's 64 MiB physical VMEM while still allowing
            # large lane-dense tiles on v5e / v6e (128 MiB physical).
            vmem_limit_bytes=48 * 1024 * 1024,
        ),
        cost_estimate=cost,
    )(x2d, w, b2d, wa, wb)

    return out[:M, :N]


def lora_layer_forward(x, w, b, wa, wb, **kwargs):
    """x: [batch, seq, hidden] -> [batch, seq, out]  (glue reshapes in plain JAX)."""
    B, S, K = x.shape
    N = w.shape[1]
    y2d = lora_linear(x.reshape(B * S, K), w, b, wa, wb, **kwargs)
    return y2d.reshape(B, S, N)


def _reference(x, w, b, wa, wb):
    hi = jax.lax.Precision.HIGHEST
    base = jnp.matmul(x, w, precision=hi) + b
    lora = jnp.matmul(jnp.matmul(x, wa, precision=hi), wb, precision=hi)
    return base + lora


if __name__ == "__main__":
    key = jax.random.PRNGKey(0)
    k_x, k_w, k_b, k_a, k_bw = jax.random.split(key, 5)

    # Small shapes consistent with the module.
    batch, seq, hidden, out_dim, rank = 2, 8, 32, 32, 4
    x = jax.random.normal(k_x, (batch, seq, hidden), dtype=jnp.float32)
    w = jax.random.normal(k_w, (hidden, out_dim), dtype=jnp.float32) * 0.05
    b = jax.random.normal(k_b, (out_dim,), dtype=jnp.float32) * 0.01
    wa = jax.random.normal(k_a, (hidden, rank), dtype=jnp.float32) * 0.05
    wb = jax.random.normal(k_bw, (rank, out_dim), dtype=jnp.float32) * 0.05

    ref = _reference(x, w, b, wa, wb)

    # f32 compute path.
    y32 = jax.block_until_ready(
        lora_layer_forward(x, w, b, wa, wb, compute_dtype=None))
    assert jnp.allclose(y32, ref, atol=2e-3, rtol=2e-3), "f32 mismatch vs reference"

    # Default bf16 compute path (MXU-native, f32 accumulation).
    ybf = jax.block_until_ready(lora_layer_forward(x, w, b, wa, wb))
    assert jnp.allclose(ybf, ref, atol=5e-2, rtol=5e-2), "bf16 mismatch vs reference"

    # Multi-tile configuration: exercises the K reduction axis, N tiling and the
    # cached LoRA down-projection (>= 2 row tiles -> cache_a=True).
    M2, K2, N2, R2 = 384, 256, 384, 8
    x2 = jax.random.normal(k_x, (M2, K2), dtype=jnp.float32)
    w2 = jax.random.normal(k_w, (K2, N2), dtype=jnp.float32) * 0.02
    b2 = jax.random.normal(k_b, (N2,), dtype=jnp.float32) * 0.01
    wa2 = jax.random.normal(k_a, (K2, R2), dtype=jnp.float32) * 0.02
    wb2 = jax.random.normal(k_bw, (R2, N2), dtype=jnp.float32) * 0.02
    ref2 = _reference(x2, w2, b2, wa2, wb2)

    y2 = jax.block_until_ready(
        lora_linear(x2, w2, b2, wa2, wb2,
                    tm_max=128, tn_max=128, tk_max=128, compute_dtype=None))
    assert jnp.allclose(y2, ref2, atol=5e-3, rtol=5e-3), "tiled f32 mismatch"

    print("KERNEL_OK")
</pallas_src>

<mosaic_0001>
module attributes {stable_mosaic.version = 11 : i64} {
  func.func @lora_kernel(%arg0: i32, %arg1: i32, %arg2: i32, %arg3: memref<16x32xf32, #tpu.memory_space<vmem>>, %arg4: memref<32x32xf32, #tpu.memory_space<vmem>>, %arg5: memref<1x32xf32, #tpu.memory_space<vmem>>, %arg6: memref<32x128xf32, #tpu.memory_space<vmem>>, %arg7: memref<128x32xf32, #tpu.memory_space<vmem>>, %arg8: memref<16x32xf32, #tpu.memory_space<vmem>>, %arg9: memref<16x32xf32, #tpu.memory_space<vmem>>, %arg10: memref<16x128xf32, #tpu.memory_space<vmem>>) attributes {dimension_semantics = [#tpu.dimension_semantics<parallel>, #tpu.dimension_semantics<parallel>, #tpu.dimension_semantics<arbitrary>], iteration_bounds = array<i64: 1, 1, 1>, scalar_prefetch = 0 : i64, scratch_operands = 2 : i64, tpu.core_type = #tpu.core_type<tc>, window_params = [{transform_indices = @transform_0, window_bounds = array<i64: 16, 32>}, {transform_indices = @transform_1, window_bounds = array<i64: 32, 32>}, {transform_indices = @transform_2, window_bounds = array<i64: 1, 32>}, {transform_indices = @transform_3, window_bounds = array<i64: 32, 128>}, {transform_indices = @transform_4, window_bounds = array<i64: 128, 32>}, {transform_indices = @transform_5, window_bounds = array<i64: 16, 32>}]} {
    %c0_i32 = arith.constant 0 : i32
    %0 = arith.cmpi eq, %arg2, %c0_i32 : i32
    %1 = arith.extui %0 : i1 to i32
    %c0_i32_0 = arith.constant 0 : i32
    %2 = arith.cmpi ne, %1, %c0_i32_0 : i32
    scf.if %2 {
      %cst_21 = arith.constant 0.000000e+00 : f32
      %21 = vector.broadcast %cst_21 : f32 to vector<16x32xf32>
      %c0_22 = arith.constant 0 : index
      %c0_23 = arith.constant 0 : index
      %22 = vector.load %arg9[%c0_22, %c0_23] : memref<16x32xf32, #tpu.memory_space<vmem>>, vector<16x32xf32>
      tpu.vector_store %arg9[%c0_22, %c0_23], %21 {strides = array<i32>} : memref<16x32xf32, #tpu.memory_space<vmem>>, vector<16x32xf32>,
    } else {
    }
    %c0_i32_1 = arith.constant 0 : i32
    %3 = arith.cmpi eq, %arg2, %c0_i32_1 : i32
    %4 = arith.extui %3 : i1 to i32
    %c0_i32_2 = arith.constant 0 : i32
    %5 = arith.cmpi ne, %4, %c0_i32_2 : i32
    scf.if %5 {
      %cst_21 = arith.constant 0.000000e+00 : f32
      %21 = vector.broadcast %cst_21 : f32 to vector<16x128xf32>
      %c0_22 = arith.constant 0 : index
      %c0_23 = arith.constant 0 : index
      %22 = vector.load %arg10[%c0_22, %c0_23] : memref<16x128xf32, #tpu.memory_space<vmem>>, vector<16x128xf32>
      tpu.vector_store %arg10[%c0_22, %c0_23], %21 {strides = array<i32>} : memref<16x128xf32, #tpu.memory_space<vmem>>, vector<16x128xf32>,
    } else {
    }
    %c0 = arith.constant 0 : index
    %c0_3 = arith.constant 0 : index
    %6 = vector.load %arg10[%c0, %c0_3] : memref<16x128xf32, #tpu.memory_space<vmem>>, vector<16x128xf32>
    %c0_4 = arith.constant 0 : index
    %c0_5 = arith.constant 0 : index
    %7 = vector.load %arg3[%c0_4, %c0_5] : memref<16x32xf32, #tpu.memory_space<vmem>>, vector<16x32xf32>
    %c0_6 = arith.constant 0 : index
    %c0_7 = arith.constant 0 : index
    %8 = vector.load %arg6[%c0_6, %c0_7] : memref<32x128xf32, #tpu.memory_space<vmem>>, vector<32x128xf32>
    %cst = arith.constant dense<0.000000e+00> : vector<16x128xf32>
    %9 = tpu.matmul %7, %8, %cst {dimension_numbers = #tpu.dot_dimension_numbers<[1], [0], [0], [1], [0, 0, 1, 1], [], []>} : vector<16x32xf32>, vector<32x128xf32>, vector<16x128xf32> -> vector<16x128xf32>
    %10 = arith.addf %6, %9 : vector<16x128xf32>
    %c0_8 = arith.constant 0 : index
    %c0_9 = arith.constant 0 : index
    %11 = vector.load %arg10[%c0_8, %c0_9] : memref<16x128xf32, #tpu.memory_space<vmem>>, vector<16x128xf32>
    tpu.vector_store %arg10[%c0_8, %c0_9], %10 {strides = array<i32>} : memref<16x128xf32, #tpu.memory_space<vmem>>, vector<16x128xf32>,
    %c0_10 = arith.constant 0 : index
    %c0_11 = arith.constant 0 : index
    %12 = vector.load %arg9[%c0_10, %c0_11] : memref<16x32xf32, #tpu.memory_space<vmem>>, vector<16x32xf32>
    %c0_12 = arith.constant 0 : index
    %c0_13 = arith.constant 0 : index
    %13 = vector.load %arg3[%c0_12, %c0_13] : memref<16x32xf32, #tpu.memory_space<vmem>>, vector<16x32xf32>
    %c0_14 = arith.constant 0 : index
    %c0_15 = arith.constant 0 : index
    %14 = vector.load %arg4[%c0_14, %c0_15] : memref<32x32xf32, #tpu.memory_space<vmem>>, vector<32x32xf32>
    %cst_16 = arith.constant dense<0.000000e+00> : vector<16x32xf32>
    %15 = tpu.matmul %13, %14, %cst_16 {dimension_numbers = #tpu.dot_dimension_numbers<[1], [0], [0], [1], [0, 0, 1, 1], [], []>} : vector<16x32xf32>, vector<32x32xf32>, vector<16x32xf32> -> vector<16x32xf32>
    %16 = arith.addf %12, %15 : vector<16x32xf32>
    %c0_17 = arith.constant 0 : index
    %c0_18 = arith.constant 0 : index
    %17 = vector.load %arg9[%c0_17, %c0_18] : memref<16x32xf32, #tpu.memory_space<vmem>>, vector<16x32xf32>
    tpu.vector_store %arg9[%c0_17, %c0_18], %16 {strides = array<i32>} : memref<16x32xf32, #tpu.memory_space<vmem>>, vector<16x32xf32>,
    %c0_i32_19 = arith.constant 0 : i32
    %18 = arith.cmpi eq, %arg2, %c0_i32_19 : i32
    %19 = arith.extui %18 : i1 to i32
    %c0_i32_20 = arith.constant 0 : i32
    %20 = arith.cmpi ne, %19, %c0_i32_20 : i32
    scf.if %20 {
      %c0_21 = arith.constant 0 : index
      %c0_22 = arith.constant 0 : index
      %21 = vector.load %arg10[%c0_21, %c0_22] : memref<16x128xf32, #tpu.memory_space<vmem>>, vector<16x128xf32>
      %c0_23 = arith.constant 0 : index
      %c0_24 = arith.constant 0 : index
      %22 = vector.load %arg7[%c0_23, %c0_24] : memref<128x32xf32, #tpu.memory_space<vmem>>, vector<128x32xf32>
      %cst_25 = arith.constant dense<0.000000e+00> : vector<16x32xf32>
      %23 = tpu.matmul %21, %22, %cst_25 {dimension_numbers = #tpu.dot_dimension_numbers<[1], [0], [0], [1], [0, 0, 1, 1], [], []>} : vector<16x128xf32>, vector<128x32xf32>, vector<16x32xf32> -> vector<16x32xf32>
      %c0_26 = arith.constant 0 : index
      %c0_27 = arith.constant 0 : index
      %24 = vector.load %arg9[%c0_26, %c0_27] : memref<16x32xf32, #tpu.memory_space<vmem>>, vector<16x32xf32>
      %c0_28 = arith.constant 0 : index
      %c0_29 = arith.constant 0 : index
      %25 = vector.load %arg5[%c0_28, %c0_29] : memref<1x32xf32, #tpu.memory_space<vmem>>, vector<1x32xf32>
      %26 = vector.broadcast %25 : vector<1x32xf32> to vector<16x32xf32>
      %27 = arith.addf %24, %26 : vector<16x32xf32>
      %28 = arith.addf %27, %23 : vector<16x32xf32>
      %c0_30 = arith.constant 0 : index
      %c0_31 = arith.constant 0 : index
      %29 = vector.load %arg8[%c0_30, %c0_31] : memref<16x32xf32, #tpu.memory_space<vmem>>, vector<16x32xf32>
      tpu.vector_store %arg8[%c0_30, %c0_31], %28 {strides = array<i32>} : memref<16x32xf32, #tpu.memory_space<vmem>>, vector<16x32xf32>,
    } else {
    }
    return
  }
  func.func @transform_0(%arg0: i32, %arg1: i32, %arg2: i32) -> (i32, i32) {
    %c0_i32 = arith.constant 0 : i32
    return %arg0, %arg2 : i32, i32
  }
  func.func @transform_1(%arg0: i32, %arg1: i32, %arg2: i32) -> (i32, i32) {
    %c0_i32 = arith.constant 0 : i32
    return %arg2, %arg1 : i32, i32
  }
  func.func @transform_2(%arg0: i32, %arg1: i32, %arg2: i32) -> (i32, i32) {
    %c0_i32 = arith.constant 0 : i32
    %c0_i32_0 = arith.constant 0 : i32
    return %c0_i32, %arg1 : i32, i32
  }
  func.func @transform_3(%arg0: i32, %arg1: i32, %arg2: i32) -> (i32, i32) {
    %c0_i32 = arith.constant 0 : i32
    %c0_i32_0 = arith.constant 0 : i32
    return %arg2, %c0_i32 : i32, i32
  }
  func.func @transform_4(%arg0: i32, %arg1: i32, %arg2: i32) -> (i32, i32) {
    %c0_i32 = arith.constant 0 : i32
    %c0_i32_0 = arith.constant 0 : i32
    return %c0_i32, %arg1 : i32, i32
  }
  func.func @transform_5(%arg0: i32, %arg1: i32, %arg2: i32) -> (i32, i32) {
    %c0_i32 = arith.constant 0 : i32
    return %arg0, %arg1 : i32, i32
  }
}

</mosaic_0001>

<bundles_post_ra>
// kernel: tpu_custom_call.1
= control target key start
LH: loop header
LB: loop body
LE: loop exit
PB: predicated region body
PF: predicated region fallthrough
CT: control target
= control target key end

     0   :  { %vm25_vm0 = vcmask 261120   ;;  %s649_s0 = inlined_call_operand.vmem [shape: f32[16,32], index: 0, kind: input, shape index: {}]   ;;  %s650_s1 = inlined_call_operand.vmem [shape: f32[32,32], index: 1, kind: input, shape index: {}]   ;;  %s651_s2 = inlined_call_operand.vmem [shape: f32[1,32], index: 2, kind: input, shape index: {}]   ;;  %s652_s3 = inlined_call_operand.vmem [shape: f32[32,128], index: 3, kind: input, shape index: {}]   ;;  %s653_s4 = inlined_call_operand.vmem [shape: f32[128,32], index: 4, kind: input, shape index: {}]   ;;  %s654_s5 = inlined_call_operand.hbm [shape: f32[16,32], index: 5, kind: output, shape index: {}]  }
   0x1   :  { %v34_v0 = vld [vmem:[%s652_s3] sm:$0xff]  ;;  %v35_v1 = vld [vmem:[%s652_s3 + $0x8] sm:$0xff]  ;;  %v36_v2 = vld [vmem:[%s652_s3 + $0x10] sm:$0xff] }
   0x2   :  { %v436_v3 = vpack.c.bf16 %v35_v1, %v34_v0  ;;  %v37_v4 = vld [vmem:[%s652_s3 + $0x18] sm:$0xff]  ;;  %v32_v5 = vld [vmem:[%s649_s0] sm:$0xff]  ;;  %v223_v8 = vld [vmem:[%s653_s4 + $0x8] sm:$0xff] }
   0x3   :  { %v440_v6 = vpack.c.bf16 %v37_v4, %v36_v2  ;;  %387 = vmatprep.mubr.msk.f32.mxu1 %vm25_vm0, %v32_v5  ;;  %v222_v7 = vld [vmem:[%s653_s4] sm:$0xff]  ;;  %v224_v9 = vld [vmem:[%s653_s4 + $0x10] sm:$0xff]  ;;  %v225_v11 = vld [vmem:[%s653_s4 + $0x18] sm:$0xff] }
   0x4   :  { %437 = vmatprep.subr.bf16.mxu1 %v436_v3  ;;  %v452_v10 = vpack.c.bf16 %v223_v8, %v222_v7  ;;  %v226_v12 = vld [vmem:[%s653_s4 + $0x20] sm:$0xff]  ;;  %v456_v13 = vpack.c.bf16 %v225_v11, %v224_v9  ;;  %v227_v14 = vld [vmem:[%s653_s4 + $0x28] sm:$0xff]  ;;  %v130_v18 = vld [vmem:[%s650_s1 + $0x10] sm:$0xff] }
   0x5   :  { %439 = vmatpush3.bf16.msra.mxu1 %v436_v3  ;;  %v128_v15 = vld [vmem:[%s650_s1] sm:$0xff]  ;;  %v129_v16 = vld [vmem:[%s650_s1 + $0x8] sm:$0xff]  ;;  %v131_v19 = vld [vmem:[%s650_s1 + $0x18] sm:$0xff]  ;;  %v460_v21 = vpack.c.bf16 %v227_v14, %v226_v12 }
   0x6   :  { %441 = vmatprep.subr.bf16.mxu1 %v440_v6  ;;  %453 = vmatprep.subr.bf16.mxu0 %v452_v10  ;;  %v444_v17 = vpack.c.bf16 %v129_v16, %v128_v15  ;;  %v33_v20 = vld [vmem:[%s649_s0 + $0x8] sm:$0xff]  ;;  %v228_v22 = vld [vmem:[%s653_s4 + $0x30] sm:$0xff]  ;;  %v229_v23 = vld [vmem:[%s653_s4 + $0x38] sm:$0xff] }
   0x7   :  { %455 = vmatpush3.bf16.msra.mxu0 %v452_v10 }
   0x8   :  { %457 = vmatprep.subr.bf16.mxu0 %v456_v13 }
   0x9   :  { %443 = vmatpush3.bf16.msra.mxu1 %v440_v6 }
   0xa   :  { %10 = vsyncpa [#allocation5], 0  ;;  %445 = vmatprep.subr.bf16.mxu1 %v444_v17  ;;  %v448_v24 = vpack.c.bf16 %v131_v19, %v130_v18  ;;  %v464_v25 = vpack.c.bf16 %v229_v23, %v228_v22  ;;  %v230_v26 = vld [vmem:[%s653_s4 + $0x40] sm:$0xff]  ;;  %v231_v27 = vld [vmem:[%s653_s4 + $0x48] sm:$0xff]  ;;  %v512_v38 = vmov 0.0   ;;  %s513_s17 = smov [#allocation4]  }
   0xb   :  { %459 = vmatpush3.bf16.msra.mxu0 %v456_v13  ;;  %v468_v28 = vpack.c.bf16 %v231_v27, %v230_v26  ;;  %v232_v29 = vld [vmem:[%s653_s4 + $0x50] sm:$0xff]  ;;  %v233_v30 = vld [vmem:[%s653_s4 + $0x58] sm:$0xff]  ;;  %v234_v32 = vld [vmem:[%s653_s4 + $0x60] sm:$0xff]  ;;  %27 = vst.msk [vmem:[#allocation2 + $0x8] sm:$0xff] %vm25_vm0, %v512_v38  ;;  %s333_s18 = sshll.u32 %s513_s17, 4  ;;  %s334_s18 = int_to_ptr.vmem [resolvable:$true] %s333_s18 }
   0xc   :  { %388 = vmatmul.mubr.msk.f32.vlgmr.msra.gmra.mrb[0].mxu1 %vm25_vm0, %v33_v20  ;;  %461 = vmatprep.subr.bf16.mxu0 %v460_v21  ;;  %v472_v31 = vpack.c.bf16 %v233_v30, %v232_v29  ;;  %v235_v33 = vld [vmem:[%s653_s4 + $0x68] sm:$0xff]  ;;  %v236_v35 = vld [vmem:[%s653_s4 + $0x70] sm:$0xff]  ;;  %v237_v36 = vld [vmem:[%s653_s4 + $0x78] sm:$0xff]  ;;  %26 = vst.msk [vmem:[#allocation2] sm:$0xff] %vm25_vm0, %v512_v38  ;;  %s488_s19 = scalar_lea.vmem %s334_s18, 256  ;;  %p493_p1 = scmp.lt.s32.totalorder %s334_s18, %s334_s18 }
   0xd   :  { %447 = vmatpush3.bf16.msra.mxu1 %v444_v17  ;;  %398 = vmatprep.mubr.msk.f32.mxu1 %vm25_vm0, %v32_v5  ;;  %v476_v34 = vpack.c.bf16 %v235_v33, %v234_v32  ;;  %v480_v37 = vpack.c.bf16 %v237_v36, %v236_v35  ;;  %v348_v48 = vld [vmem:[%s651_s2] ss:$0 sm:$0xff]  ;;  %p489_p0 = scmp.ne.s32.totalorder %s334_s18, %s488_s19  ;;  %p494_p2 = scmp.lt.s32.totalorder %s488_s19, %s488_s19 }
   0xe   :  { %449 = vmatprep.subr.bf16.mxu1 %v448_v24 }
   0xf   :  { %463 = vmatpush3.bf16.msra.mxu0 %v460_v21  ;;  %p495_p3 = por %p494_p2, %p493_p1 }
  0x10   :  { %465 = vmatprep.subr.bf16.mxu0 %v464_v25 }
  0x11   :  { %451 = vmatpush3.bf16.msra.mxu1 %v448_v24  ;;  %p496_p4 = pnand %p495_p3, %p489_p0 }
  0x12   :  { %v125_v41 = vld [vmem:[#allocation2 + $0x8] sm:$0xff] }
  0x13   :  { %467 = vmatpush3.bf16.msra.mxu0 %v464_v25  ;;  %v124_v42 = vld [vmem:[#allocation2] sm:$0xff] }
  0x14   :  { %469 = vmatprep.subr.bf16.mxu0 %v468_v28  ;;  %399 = vmatmul.mubr.msk.f32.vlgmr.msra.gmra.mrb[2].mxu1 %vm25_vm0, %v33_v20 }
  0x17   :  { %471 = vmatpush3.bf16.msra.mxu0 %v468_v28 }
  0x18   :  { %473 = vmatprep.subr.bf16.mxu0 %v472_v31 }
  0x1b   :  { %475 = vmatpush3.bf16.msra.mxu0 %v472_v31 }
  0x1c   :  { %477 = vmatprep.subr.bf16.mxu0 %v476_v34 }
  0x1f   :  { %479 = vmatpush3.bf16.msra.mxu0 %v476_v34 }
  0x20   :  { %481 = vmatprep.subr.bf16.mxu0 %v480_v37 }
  0x23   :  { %483 = vmatpush3.bf16.msra.mxu0 %v480_v37 }
  0xdf   :  { %v389_v39 = vpop.f32.mrb[0].mxu1 }
  0xe0   :  { %v111_v40 = vpop.f32.mrb[1].mxu1 }
  0xe1   :  { %433 = vmatprep.mubr.f32.mxu0 %v111_v40 }
  0xe2   :  { %434 = vmatmul.mubr.f32.vlgmr.msra.gmra.mrb[0].mxu0 %v389_v39 }
  0xe7   :  { %v400_v43 = vpop.f32.mrb[2].mxu1 }
  0xe8   :  { %v214_v44 = vadd.f32 %v400_v43, %v125_v41  ;;  %v204_v45 = vpop.f32.mrb[3].mxu1 }
  0xe9   :  { %v213_v46 = vadd.f32 %v204_v45, %v124_v42 }
  0xea   :  { %216 = vst.msk [vmem:[#allocation2 + $0x8] sm:$0xff] %vm25_vm0, %v214_v44 }
  0xeb   :  { %215 = vst.msk [vmem:[#allocation2] sm:$0xff] %vm25_vm0, %v213_v46 }
  0xf1   :  { %v314_v47 = vld [vmem:[#allocation2 + $0x8] sm:$0xff] }
  0xf2   :  { %v313_v49 = vld [vmem:[#allocation2] sm:$0xff]  ;;  %v323_v50 = vadd.f32 %v348_v48, %v314_v47 }
  0xf3   :  { %v322_v51 = vadd.f32 %v348_v48, %v313_v49 }
 0x1b5   :  { %v435_v52 = vpop.f32.mrb[0].mxu0 }
 0x1b6   :  { %v325_v53 = vadd.f32 %v435_v52, %v323_v50  ;;  %v304_v54 = vpop.f32.mrb[1].mxu0 }
 0x1b7   :  { %v324_v55 = vadd.f32 %v322_v51, %v304_v54 }
 0x1b8   :  { %327 = vst.msk [vmem:[#allocation4 + $0x8] sm:$0xff] %vm25_vm0, %v325_v53 }
 0x1b9   :  { %326 = vst.msk [vmem:[#allocation4] sm:$0xff] %vm25_vm0, %v324_v55 }
 0x1ba   :  { %499 = shalt.err (!%p496_p4)
}
 0x1bb   :  { %s500_s21 = scalar_lea.hbm %s654_s5, 256 }
 0x1bc   :  { %p501_p5 = scmp.ne.s32.totalorder %s654_s5, %s500_s21  ;;  %p504_p6 = scmp.lt.u32.totalorder %s500_s21, %s654_s5 }
 0x1be   :  { %p506_p7 = pnand %p504_p6, %p501_p5 }
 0x1c0   :  { %509 = shalt.err (!%p506_p7)
}
 0x1c1   :  { %s514_s26 = smov 128   ;;  %s515_s27 = smov 8  }
 0x1c2   :  { %339 = dma.vmem_to_hbm [thread:$0]  %s334_s18, 256, %s654_s5, [#allocation5], %s514_s26, %s514_s26, %s515_s27  }
 0x1c3   :  { %510 = dma.done.wait [#allocation5], 256  }
 0x1c4   :  { %511 = vsyncadd [#allocation5], 4294967040 }
 0x1c5   :  { %343 = vsyncpa [#allocation5], 1 }

</bundles_post_ra>
